<compile_context>
chip_gen: v6e
topology: v6e:2x2x1
jax: 0.10.0
libtpu: 0.0.40
codegen_flags: <defaults>
</compile_context>

<pallas_src>
import numpy as np
import jax
import jax.numpy as jnp
from jax.experimental import pallas as pl
from jax.experimental.pallas import tpu as pltpu

B, T, D, F = 2, 8, 128, 128   # batch, seq len, encoder dim, predictor filter size
LN_EPS = 1e-5                 # nn.LayerNorm default


# ---------------------------------------------------------------------------
# Kernel 1: DurationPredictor
#   (conv1d k=3 pad=1 -> +bias -> LayerNorm -> ReLU) x 2 -> Linear(F,1) -> ReLU
# ---------------------------------------------------------------------------
def _duration_predictor_kernel(x_ref, w1_ref, aff1_ref, w2_ref, aff2_ref,
                               lw_ref, lb_ref, out_ref):
    x = x_ref[0]                                         # (T, D) f32

    def shifted_stack(h):
        # [h[t-1] | h[t] | h[t+1]] with zero padding at the sequence ends, so
        # the whole k=3 conv collapses to ONE (T, 3C) @ (3C, F) MXU matmul.
        # (With tap fusion the stacked-operand build dominates the shift cost;
        #  pltpu.roll + masked boundary rows is a further XLU-side refinement.)
        zero = jnp.zeros((1, h.shape[1]), h.dtype)
        hp = jnp.concatenate([zero, h, zero], axis=0)                 # (T+2, C)
        return jnp.concatenate([hp[:-2], hp[1:-1], hp[2:]], axis=-1)  # (T, 3C)

    def conv_ln_relu(h, w_ref, aff_ref):
        y = jnp.dot(shifted_stack(h), w_ref[...],
                    preferred_element_type=jnp.float32)               # (T, F)
        y = y + aff_ref[0:1, :]                                       # conv bias
        mu = jnp.mean(y, axis=-1, keepdims=True)
        var = jnp.mean((y - mu) ** 2, axis=-1, keepdims=True)
        yn = (y - mu) * jax.lax.rsqrt(var + LN_EPS)
        yn = yn * aff_ref[1:2, :] + aff_ref[2:3, :]                   # LN affine
        return jnp.maximum(yn, 0.0)           # ReLU; dropout == identity (eval)

    h = conv_ln_relu(x, w1_ref, aff1_ref)
    h = conv_ln_relu(h, w2_ref, aff2_ref)
    dur = jnp.sum(h * lw_ref[...], axis=-1, keepdims=True) + lb_ref[0]  # (T, 1)
    out_ref[0] = jnp.maximum(dur, 0.0)


def duration_predictor(x, params):
    w1p, aff1, w2p, aff2, lw, lb = params
    Bb, Tt, Dd = x.shape

    def resident(a):   # full-array block, constant index -> stays VMEM-resident
        return pl.BlockSpec(a.shape, lambda b: (0,) * a.ndim)

    out = pl.pallas_call(
        _duration_predictor_kernel,
        out_shape=jax.ShapeDtypeStruct((Bb, Tt, 1), jnp.float32),
        grid=(Bb,),
        in_specs=[pl.BlockSpec((1, Tt, Dd), lambda b: (b, 0, 0)),
                  resident(w1p), resident(aff1),
                  resident(w2p), resident(aff2), resident(lw),
                  pl.BlockSpec(memory_space=pltpu.MemorySpace.SMEM)],  # scalar bias
        out_specs=pl.BlockSpec((1, Tt, 1), lambda b: (b, 0, 0)),
        compiler_params=pltpu.CompilerParams(
            dimension_semantics=("parallel",)),     # both TensorCores on v7x
    )(x, w1p, aff1, w2p, aff2, lw, lb)
    return out[..., 0]                               # (B, T)


# ---------------------------------------------------------------------------
# Kernel 2: LR expansion as a row gather (replaces the one-hot alignment matmul)
#   out[i, :] = x_rows[src[i], :]   with src prefetched to SMEM.
# ---------------------------------------------------------------------------
def _lr_gather_kernel(src_ref, x_ref, o_ref):
    del src_ref                       # consumed by the index_maps; body is a copy
    o_ref[...] = x_ref[...]


def lr_gather(x_rows, src):
    n, d = src.shape[0], x_rows.shape[-1]
    return pl.pallas_call(
        _lr_gather_kernel,
        out_shape=jax.ShapeDtypeStruct((n, d), x_rows.dtype),
        grid_spec=pltpu.PrefetchScalarGridSpec(
            num_scalar_prefetch=1,
            grid=(n,),
            in_specs=[pl.BlockSpec((1, d), lambda i, src_ref: (src_ref[i], 0))],
            out_specs=pl.BlockSpec((1, d), lambda i, src_ref: (i, 0)),
        ),
        compiler_params=pltpu.CompilerParams(
            dimension_semantics=("parallel",)),
    )(src, x_rows)


# ---------------------------------------------------------------------------
# Glue (host / plain JAX): gather-table construction + forward orchestration
# ---------------------------------------------------------------------------
def LR(x, duration, mel_max_length=None):
    # torch reference pulls durations to host (.cpu().numpy()); same here, since
    # expand_max_len (and the gather table) is data-dependent and must be static.
    dur_np = np.maximum(np.asarray(jax.device_get(duration)).astype(np.int64), 0)
    Bb, Tt, Dd = x.shape
    L = max(int(dur_np.sum(axis=-1).max()), 1)          # guard all-zero durations
    # per-output-frame source row; frames past a batch's length hit its zero row
    src = np.full((Bb, L), Tt, dtype=np.int32)
    for b in range(Bb):
        tot = int(dur_np[b].sum())
        src[b, :tot] = np.repeat(np.arange(Tt, dtype=np.int32), dur_np[b])
    src_flat = (src + (np.arange(Bb, dtype=np.int32) * (Tt + 1))[:, None]).reshape(-1)
    x_rows = jnp.concatenate([x, jnp.zeros((Bb, 1, Dd), x.dtype)],
                             axis=1).reshape(Bb * (Tt + 1), Dd)
    out = lr_gather(x_rows, jnp.asarray(src_flat)).reshape(Bb, L, Dd)
    if mel_max_length is not None:
        out = jnp.pad(out, ((0, 0), (0, mel_max_length - L), (0, 0)))
    return out


def length_regulator_forward(x, params, alpha=1.0, target=None, mel_max_length=None):
    dp_out = duration_predictor(x, params)               # (B, T) f32
    if target is not None:
        return LR(x, target, mel_max_length=mel_max_length), dp_out
    # inference: ((d + 0.5) * alpha).int()  — matches torch order, trunc toward 0
    dur = np.trunc((np.asarray(jax.device_get(dp_out)) + 0.5) * alpha).astype(np.int32)
    out = LR(x, dur)
    mel_pos = jnp.arange(1, out.shape[1] + 1, dtype=jnp.int32)[None, :]
    return out, mel_pos


# ---------------------------------------------------------------------------
# Deterministic parameters (packed layout) + pure-JAX references + demo
# ---------------------------------------------------------------------------
def make_params(key):
    ks = jax.random.split(key, 6)
    w1 = jax.random.normal(ks[0], (3, D, F), jnp.float32) * 0.05   # (K, Din, F)
    b1 = jax.random.normal(ks[1], (1, F), jnp.float32) * 0.05
    w2 = jax.random.normal(ks[2], (3, F, F), jnp.float32) * 0.05
    b2 = jax.random.normal(ks[3], (1, F), jnp.float32) * 0.05
    lw = jax.random.normal(ks[4], (1, F), jnp.float32) * 0.05      # Linear(F, 1)
    lb = jax.random.normal(ks[5], (1,), jnp.float32) * 0.05        # Linear bias
    g1, be1 = jnp.ones((1, F), jnp.float32), jnp.zeros((1, F), jnp.float32)
    g2, be2 = jnp.ones((1, F), jnp.float32), jnp.zeros((1, F), jnp.float32)
    w1p = w1.reshape(3 * D, F)                       # rows = [Wk0; Wk1; Wk2]
    w2p = w2.reshape(3 * F, F)
    aff1 = jnp.concatenate([b1, g1, be1], axis=0)    # (3, F)
    aff2 = jnp.concatenate([b2, g2, be2], axis=0)
    return (w1p, aff1, w2p, aff2, lw, lb)


def dp_reference(x, params):
    w1p, aff1, w2p, aff2, lw, lb = params

    def conv_ln_relu(h, wp, aff):
        zero = jnp.zeros_like(h[:, :1, :])
        hp = jnp.concatenate([zero, h, zero], axis=1)
        stacked = jnp.concatenate([hp[:, :-2], hp[:, 1:-1], hp[:, 2:]], axis=-1)
        y = jnp.einsum('btc,cf->btf', stacked, wp,
                       precision=jax.lax.Precision.HIGHEST) + aff[0]
        mu = y.mean(-1, keepdims=True)
        var = ((y - mu) ** 2).mean(-1, keepdims=True)
        yn = (y - mu) / jnp.sqrt(var + LN_EPS)
        return jnp.maximum(yn * aff[1] + aff[2], 0.0)

    h = conv_ln_relu(x, w1p, aff1)
    h = conv_ln_relu(h, w2p, aff2)
    return jnp.maximum(jnp.sum(h * lw, -1) + lb[0], 0.0)


def build_alignment(durations, L, dtype):
    dur = jnp.asarray(durations, jnp.int32)
    cum = jnp.cumsum(dur, axis=1)
    starts = cum - dur
    k = jnp.arange(L, dtype=jnp.int32)
    mask = ((k[None, :, None] >= starts[:, None, :]) &
            (k[None, :, None] < cum[:, None, :]))
    return mask.astype(dtype)


if __name__ == "__main__":
    key = jax.random.PRNGKey(0)
    k_x, k_p = jax.random.split(key)
    x = jax.random.normal(k_x, (B, T, D), jnp.float32)
    params = make_params(k_p)

    target = np.array([[2, 1, 3, 0, 2, 1, 2, 1],
                       [1, 2, 2, 1, 0, 3, 1, 2]], dtype=np.int32)

    # training path (ground-truth durations)
    output, dur_pred = length_regulator_forward(x, params, target=target)
    jax.block_until_ready(output)
    jax.block_until_ready(dur_pred)
    L = int(target.sum(-1).max())
    assert output.shape == (B, L, D)
    assert dur_pred.shape == (B, T)

    # correctness vs pure-JAX references
    ref_dp = dp_reference(x, params)
    np.testing.assert_allclose(np.asarray(dur_pred), np.asarray(ref_dp),
                               atol=2e-2, rtol=2e-2)   # MXU f32 pass differences
    align = build_alignment(target, L, x.dtype)
    ref_out = jnp.einsum('blt,btd->bld', align, x,
                         precision=jax.lax.Precision.HIGHEST)
    np.testing.assert_allclose(np.asarray(output), np.asarray(ref_out),
                               atol=1e-5, rtol=1e-5)

    # inference path (predicted durations, rounding + mel_pos); also exercises
    # the L >= 1 guard when all rounded durations are zero.
    out_inf, mel_pos = length_regulator_forward(x, params, alpha=1.0)
    jax.block_until_ready(out_inf)
    assert mel_pos.shape == (1, out_inf.shape[1])

    print("KERNEL_OK")
</pallas_src>

<mosaic_0001>
module attributes {stable_mosaic.version = 11 : i64} {
  func.func @_duration_predictor_kernel(%arg0: i32, %arg1: memref<1x8x128xf32, #tpu.memory_space<vmem>>, %arg2: memref<384x128xf32, #tpu.memory_space<vmem>>, %arg3: memref<3x128xf32, #tpu.memory_space<vmem>>, %arg4: memref<384x128xf32, #tpu.memory_space<vmem>>, %arg5: memref<3x128xf32, #tpu.memory_space<vmem>>, %arg6: memref<1x128xf32, #tpu.memory_space<vmem>>, %arg7: memref<1xf32, #tpu.memory_space<smem>>, %arg8: memref<1x8x1xf32, #tpu.memory_space<vmem>>) attributes {dimension_semantics = [#tpu.dimension_semantics<parallel>], iteration_bounds = array<i64: 2>, scalar_prefetch = 0 : i64, scratch_operands = 0 : i64, tpu.core_type = #tpu.core_type<tc>, window_params = [{transform_indices = @transform_0, window_bounds = array<i64: 1, 8, 128>}, {pipeline_mode = #tpu.pipeline_mode<synchronous>, transform_indices = @transform_1, window_bounds = array<i64: 384, 128>}, {pipeline_mode = #tpu.pipeline_mode<synchronous>, transform_indices = @transform_2, window_bounds = array<i64: 3, 128>}, {pipeline_mode = #tpu.pipeline_mode<synchronous>, transform_indices = @transform_3, window_bounds = array<i64: 384, 128>}, {pipeline_mode = #tpu.pipeline_mode<synchronous>, transform_indices = @transform_4, window_bounds = array<i64: 3, 128>}, {pipeline_mode = #tpu.pipeline_mode<synchronous>, transform_indices = @transform_5, window_bounds = array<i64: 1, 128>}, {transform_indices = @transform_6, window_bounds = array<i64: 1>}, {transform_indices = @transform_7, window_bounds = array<i64: 1, 8, 1>}]} {
    %c0 = arith.constant 0 : index
    %c0_0 = arith.constant 0 : index
    %c0_1 = arith.constant 0 : index
    %0 = vector.load %arg1[%c0, %c0_0, %c0_1] : memref<1x8x128xf32, #tpu.memory_space<vmem>>, vector<1x8x128xf32>
    %1 = vector.shape_cast %0 : vector<1x8x128xf32> to vector<8x128xf32>
    %cst = arith.constant 0.000000e+00 : f32
    %2 = vector.broadcast %cst : f32 to vector<1x128xf32>
    %3 = tpu.concatenate %2, %1, %2 in 0 : vector<1x128xf32>, vector<8x128xf32>, vector<1x128xf32> -> vector<10x128xf32>
    %4 = vector.extract_strided_slice %3 {offsets = [0, 0], sizes = [8, 128], strides = [1, 1]} : vector<10x128xf32> to vector<8x128xf32>
    %5 = vector.extract_strided_slice %3 {offsets = [1, 0], sizes = [8, 128], strides = [1, 1]} : vector<10x128xf32> to vector<8x128xf32>
    %6 = vector.extract_strided_slice %3 {offsets = [2, 0], sizes = [8, 128], strides = [1, 1]} : vector<10x128xf32> to vector<8x128xf32>
    %7 = tpu.concatenate %4, %5, %6 in 1 : vector<8x128xf32>, vector<8x128xf32>, vector<8x128xf32> -> vector<8x384xf32>
    %c0_2 = arith.constant 0 : index
    %c0_3 = arith.constant 0 : index
    %8 = vector.load %arg2[%c0_2, %c0_3] : memref<384x128xf32, #tpu.memory_space<vmem>>, vector<384x128xf32>
    %cst_4 = arith.constant dense<0.000000e+00> : vector<8x128xf32>
    %9 = tpu.matmul %7, %8, %cst_4 {dimension_numbers = #tpu.dot_dimension_numbers<[1], [0], [0], [1], [0, 0, 1, 1], [], []>} : vector<8x384xf32>, vector<384x128xf32>, vector<8x128xf32> -> vector<8x128xf32>
    %c0_5 = arith.constant 0 : index
    %c0_6 = arith.constant 0 : index
    %10 = vector.load %arg3[%c0_5, %c0_6] : memref<3x128xf32, #tpu.memory_space<vmem>>, vector<1x128xf32>
    %11 = vector.broadcast %10 : vector<1x128xf32> to vector<8x128xf32>
    %12 = arith.addf %9, %11 : vector<8x128xf32>
    %cst_7 = arith.constant dense<0.000000e+00> : vector<8xf32>
    %13 = vector.multi_reduction <add>, %12, %cst_7 [1] : vector<8x128xf32> to vector<8xf32>
    %14 = vector.shape_cast %13 : vector<8xf32> to vector<8x1xf32>
    %cst_8 = arith.constant 1.280000e+02 : f32
    %15 = vector.broadcast %cst_8 : f32 to vector<8x1xf32>
    %16 = arith.divf %14, %15 : vector<8x1xf32>
    %17 = vector.broadcast %16 : vector<8x1xf32> to vector<8x128xf32>
    %18 = arith.subf %12, %17 : vector<8x128xf32>
    %19 = arith.mulf %18, %18 : vector<8x128xf32>
    %cst_9 = arith.constant dense<0.000000e+00> : vector<8xf32>
    %20 = vector.multi_reduction <add>, %19, %cst_9 [1] : vector<8x128xf32> to vector<8xf32>
    %21 = vector.shape_cast %20 : vector<8xf32> to vector<8x1xf32>
    %cst_10 = arith.constant 1.280000e+02 : f32
    %22 = vector.broadcast %cst_10 : f32 to vector<8x1xf32>
    %23 = arith.divf %21, %22 : vector<8x1xf32>
    %24 = vector.broadcast %16 : vector<8x1xf32> to vector<8x128xf32>
    %25 = arith.subf %12, %24 : vector<8x128xf32>
    %cst_11 = arith.constant 9.99999974E-6 : f32
    %26 = vector.broadcast %cst_11 : f32 to vector<8x1xf32>
    %27 = arith.addf %23, %26 : vector<8x1xf32>
    %28 = math.rsqrt %27 : vector<8x1xf32>
    %29 = vector.broadcast %28 : vector<8x1xf32> to vector<8x128xf32>
    %30 = arith.mulf %25, %29 : vector<8x128xf32>
    %c1 = arith.constant 1 : index
    %c0_12 = arith.constant 0 : index
    %31 = vector.load %arg3[%c1, %c0_12] : memref<3x128xf32, #tpu.memory_space<vmem>>, vector<1x128xf32>
    %32 = vector.broadcast %31 : vector<1x128xf32> to vector<8x128xf32>
    %33 = arith.mulf %30, %32 : vector<8x128xf32>
    %c2 = arith.constant 2 : index
    %c0_13 = arith.constant 0 : index
    %34 = vector.load %arg3[%c2, %c0_13] : memref<3x128xf32, #tpu.memory_space<vmem>>, vector<1x128xf32>
    %35 = vector.broadcast %34 : vector<1x128xf32> to vector<8x128xf32>
    %36 = arith.addf %33, %35 : vector<8x128xf32>
    %cst_14 = arith.constant 0.000000e+00 : f32
    %37 = vector.broadcast %cst_14 : f32 to vector<8x128xf32>
    %38 = arith.maximumf %36, %37 : vector<8x128xf32>
    %cst_15 = arith.constant 0.000000e+00 : f32
    %39 = vector.broadcast %cst_15 : f32 to vector<1x128xf32>
    %40 = tpu.concatenate %39, %38, %39 in 0 : vector<1x128xf32>, vector<8x128xf32>, vector<1x128xf32> -> vector<10x128xf32>
    %41 = vector.extract_strided_slice %40 {offsets = [0, 0], sizes = [8, 128], strides = [1, 1]} : vector<10x128xf32> to vector<8x128xf32>
    %42 = vector.extract_strided_slice %40 {offsets = [1, 0], sizes = [8, 128], strides = [1, 1]} : vector<10x128xf32> to vector<8x128xf32>
    %43 = vector.extract_strided_slice %40 {offsets = [2, 0], sizes = [8, 128], strides = [1, 1]} : vector<10x128xf32> to vector<8x128xf32>
    %44 = tpu.concatenate %41, %42, %43 in 1 : vector<8x128xf32>, vector<8x128xf32>, vector<8x128xf32> -> vector<8x384xf32>
    %c0_16 = arith.constant 0 : index
    %c0_17 = arith.constant 0 : index
    %45 = vector.load %arg4[%c0_16, %c0_17] : memref<384x128xf32, #tpu.memory_space<vmem>>, vector<384x128xf32>
    %cst_18 = arith.constant dense<0.000000e+00> : vector<8x128xf32>
    %46 = tpu.matmul %44, %45, %cst_18 {dimension_numbers = #tpu.dot_dimension_numbers<[1], [0], [0], [1], [0, 0, 1, 1], [], []>} : vector<8x384xf32>, vector<384x128xf32>, vector<8x128xf32> -> vector<8x128xf32>
    %c0_19 = arith.constant 0 : index
    %c0_20 = arith.constant 0 : index
    %47 = vector.load %arg5[%c0_19, %c0_20] : memref<3x128xf32, #tpu.memory_space<vmem>>, vector<1x128xf32>
    %48 = vector.broadcast %47 : vector<1x128xf32> to vector<8x128xf32>
    %49 = arith.addf %46, %48 : vector<8x128xf32>
    %cst_21 = arith.constant dense<0.000000e+00> : vector<8xf32>
    %50 = vector.multi_reduction <add>, %49, %cst_21 [1] : vector<8x128xf32> to vector<8xf32>
    %51 = vector.shape_cast %50 : vector<8xf32> to vector<8x1xf32>
    %cst_22 = arith.constant 1.280000e+02 : f32
    %52 = vector.broadcast %cst_22 : f32 to vector<8x1xf32>
    %53 = arith.divf %51, %52 : vector<8x1xf32>
    %54 = vector.broadcast %53 : vector<8x1xf32> to vector<8x128xf32>
    %55 = arith.subf %49, %54 : vector<8x128xf32>
    %56 = arith.mulf %55, %55 : vector<8x128xf32>
    %cst_23 = arith.constant dense<0.000000e+00> : vector<8xf32>
    %57 = vector.multi_reduction <add>, %56, %cst_23 [1] : vector<8x128xf32> to vector<8xf32>
    %58 = vector.shape_cast %57 : vector<8xf32> to vector<8x1xf32>
    %cst_24 = arith.constant 1.280000e+02 : f32
    %59 = vector.broadcast %cst_24 : f32 to vector<8x1xf32>
    %60 = arith.divf %58, %59 : vector<8x1xf32>
    %61 = vector.broadcast %53 : vector<8x1xf32> to vector<8x128xf32>
    %62 = arith.subf %49, %61 : vector<8x128xf32>
    %cst_25 = arith.constant 9.99999974E-6 : f32
    %63 = vector.broadcast %cst_25 : f32 to vector<8x1xf32>
    %64 = arith.addf %60, %63 : vector<8x1xf32>
    %65 = math.rsqrt %64 : vector<8x1xf32>
    %66 = vector.broadcast %65 : vector<8x1xf32> to vector<8x128xf32>
    %67 = arith.mulf %62, %66 : vector<8x128xf32>
    %c1_26 = arith.constant 1 : index
    %c0_27 = arith.constant 0 : index
    %68 = vector.load %arg5[%c1_26, %c0_27] : memref<3x128xf32, #tpu.memory_space<vmem>>, vector<1x128xf32>
    %69 = vector.broadcast %68 : vector<1x128xf32> to vector<8x128xf32>
    %70 = arith.mulf %67, %69 : vector<8x128xf32>
    %c2_28 = arith.constant 2 : index
    %c0_29 = arith.constant 0 : index
    %71 = vector.load %arg5[%c2_28, %c0_29] : memref<3x128xf32, #tpu.memory_space<vmem>>, vector<1x128xf32>
    %72 = vector.broadcast %71 : vector<1x128xf32> to vector<8x128xf32>
    %73 = arith.addf %70, %72 : vector<8x128xf32>
    %cst_30 = arith.constant 0.000000e+00 : f32
    %74 = vector.broadcast %cst_30 : f32 to vector<8x128xf32>
    %75 = arith.maximumf %73, %74 : vector<8x128xf32>
    %c0_31 = arith.constant 0 : index
    %c0_32 = arith.constant 0 : index
    %76 = vector.load %arg6[%c0_31, %c0_32] : memref<1x128xf32, #tpu.memory_space<vmem>>, vector<1x128xf32>
    %77 = vector.broadcast %76 : vector<1x128xf32> to vector<8x128xf32>
    %78 = arith.mulf %75, %77 : vector<8x128xf32>
    %cst_33 = arith.constant dense<0.000000e+00> : vector<8xf32>
    %79 = vector.multi_reduction <add>, %78, %cst_33 [1] : vector<8x128xf32> to vector<8xf32>
    %80 = vector.shape_cast %79 : vector<8xf32> to vector<8x1xf32>
    %c0_34 = arith.constant 0 : index
    %81 = memref.load %arg7[%c0_34] : memref<1xf32, #tpu.memory_space<smem>>
    %82 = vector.broadcast %81 : f32 to vector<8x1xf32>
    %83 = arith.addf %80, %82 : vector<8x1xf32>
    %cst_35 = arith.constant 0.000000e+00 : f32
    %84 = vector.broadcast %cst_35 : f32 to vector<8x1xf32>
    %85 = arith.maximumf %83, %84 : vector<8x1xf32>
    %c0_36 = arith.constant 0 : index
    %c0_37 = arith.constant 0 : index
    %c0_38 = arith.constant 0 : index
    %86 = vector.load %arg8[%c0_36, %c0_37, %c0_38] : memref<1x8x1xf32, #tpu.memory_space<vmem>>, vector<1x8x1xf32>
    %87 = vector.shape_cast %86 : vector<1x8x1xf32> to vector<8x1xf32>
    %88 = vector.shape_cast %85 : vector<8x1xf32> to vector<1x8x1xf32>
    tpu.vector_store %arg8[%c0_36, %c0_37, %c0_38], %88 {strides = array<i32>} : memref<1x8x1xf32, #tpu.memory_space<vmem>>, vector<1x8x1xf32>,
    return
  }
  func.func @transform_0(%arg0: i32) -> (i32, i32, i32) {
    %c0_i32 = arith.constant 0 : i32
    %c0_i32_0 = arith.constant 0 : i32
    %c0_i32_1 = arith.constant 0 : i32
    return %arg0, %c0_i32, %c0_i32_0 : i32, i32, i32
  }
  func.func @transform_1(%arg0: i32) -> (i32, i32) {
    %c0_i32 = arith.constant 0 : i32
    %c0_i32_0 = arith.constant 0 : i32
    %c0_i32_1 = arith.constant 0 : i32
    return %c0_i32, %c0_i32_0 : i32, i32
  }
  func.func @transform_2(%arg0: i32) -> (i32, i32) {
    %c0_i32 = arith.constant 0 : i32
    %c0_i32_0 = arith.constant 0 : i32
    %c0_i32_1 = arith.constant 0 : i32
    return %c0_i32, %c0_i32_0 : i32, i32
  }
  func.func @transform_3(%arg0: i32) -> (i32, i32) {
    %c0_i32 = arith.constant 0 : i32
    %c0_i32_0 = arith.constant 0 : i32
    %c0_i32_1 = arith.constant 0 : i32
    return %c0_i32, %c0_i32_0 : i32, i32
  }
  func.func @transform_4(%arg0: i32) -> (i32, i32) {
    %c0_i32 = arith.constant 0 : i32
    %c0_i32_0 = arith.constant 0 : i32
    %c0_i32_1 = arith.constant 0 : i32
    return %c0_i32, %c0_i32_0 : i32, i32
  }
  func.func @transform_5(%arg0: i32) -> (i32, i32) {
    %c0_i32 = arith.constant 0 : i32
    %c0_i32_0 = arith.constant 0 : i32
    %c0_i32_1 = arith.constant 0 : i32
    return %c0_i32, %c0_i32_0 : i32, i32
  }
  func.func @transform_6(%arg0: i32) -> i32 {
    %c0_i32 = arith.constant 0 : i32
    %c0_i32_0 = arith.constant 0 : i32
    return %c0_i32 : i32
  }
  func.func @transform_7(%arg0: i32) -> (i32, i32, i32) {
    %c0_i32 = arith.constant 0 : i32
    %c0_i32_0 = arith.constant 0 : i32
    %c0_i32_1 = arith.constant 0 : i32
    return %arg0, %c0_i32, %c0_i32_0 : i32, i32, i32
  }
}

</mosaic_0001>

<bundles_post_ra>
// kernel: tpu_custom_call.1
= control target key start
LH: loop header
LB: loop body
LE: loop exit
PB: predicated region body
PF: predicated region fallthrough
CT: control target
= control target key end

     0   :  { %s1547_s0 = inlined_call_operand.hbm [shape: f32[2,8,128], index: 0, kind: input, shape index: {}]   ;;  %s1548_s1 = inlined_call_operand.hbm [shape: f32[384,128], index: 1, kind: input, shape index: {}]   ;;  %s1549_s2 = inlined_call_operand.vmem [shape: f32[3,128], index: 2, kind: input, shape index: {}]   ;;  %s1550_s3 = inlined_call_operand.hbm [shape: f32[384,128], index: 3, kind: input, shape index: {}]   ;;  %s1551_s4 = inlined_call_operand.vmem [shape: f32[3,128], index: 4, kind: input, shape index: {}]   ;;  %s1552_s5 = inlined_call_operand.vmem [shape: f32[1,128], index: 5, kind: input, shape index: {}]   ;;  %s1553_s6 = inlined_call_operand.<no memory space> [shape: f32[1], index: 6, kind: input, shape index: {}]   ;;  %s1554_s7 = inlined_call_operand.vmem [shape: f32[2,8,1], index: 7, kind: output, shape index: {}]  }
   0x1   :  { %12 = sst [smem:[#allocation2]] %s1553_s6 }
   0x2   :  { %13 = vsyncpa [#allocation4], 0 }
   0x3   :  { %15 = vsyncpa [#allocation4 + $0x1], 0 }
   0x4   :  { %16 = vsyncpa [#allocation6], 0  ;;  %s1330_s26 = smov 0   ;;  %s1332_s27 = smov 0  }
   0x5   :  { %s1334_s28 = smov 0   ;;  %s1336_s29 = smov 0  }
   0x6 LB: > { %s1349_s6 = sadd.s32 4294967295, %s1278_s29   ;;  %p42_p0 = scmp.ne.s32.totalorder %s1270_s27, %s1266_s26  ;;  %s1278_s29 = sphi %s1336_s29, %s1572_s29   ;;  %s1274_s28 = sphi %s1334_s28, %s1571_s28   ;;  %s1270_s27 = sphi %s1332_s27, %s1570_s27   ;;  %s1266_s26 = sphi %s1330_s26, %s1569_s26  }
   0x7   : > { %p1555_p1 = scmp.eq.s32.totalorder %s1349_s6, 0  ;;  %p894_p2 = scmp.ge.s32.totalorder %s1278_s29, 1 }
   0x8   : > { %p205_p3 = scmp.lt.s32.totalorder %s1278_s29, 3  ;;  %s1280_s9 = smov [#allocation5]  }
   0x9   : > { %p1357_p4 = por %p1555_p1, %p42_p0  ;;  %s217_s10 = sshll.u32 %s1280_s9, 4  ;;  %s218_s10 = int_to_ptr.vmem [resolvable:$true] %s217_s10 }
   0xa   : > { %p1361_p5 = pnand %p894_p2, %p205_p3  ;;  %s1281_s12 = smov [#allocation7]  }
   0xb   : > { %s1558_s30 = scalar_select %p1357_p4, 1, 0 }
   0xc   : > { %s1559_s8 = scalar_select %p1361_p5, 1, 0 }
   0xd   : > { %p1102_p6 = pneg %p1361_p5  ;;  %s233_s13 = sshll.u32 %s1281_s12, 4  ;;  %s234_s13 = int_to_ptr.vmem [resolvable:$true] %s233_s13 }
   0xe   : > { %s1171_s14 = scalar_lea.vmem %s218_s10, 6144  ;;  %p1179_p12 = scmp.lt.s32.totalorder %s218_s10, %s218_s10 }
   0xf   : > { %p1369_p7 = pnand %p1102_p6, %p1555_p1  ;;  %p1172_p9 = scmp.ne.s32.totalorder %s218_s10, %s1171_s14 }
  0x10   : > { %p1180_p13 = scmp.lt.s32.totalorder %s1171_s14, %s1171_s14 }
  0x11   : > { %p1162_p8 = pneg %p1369_p7 }
  0x12   : > { %p1181_p0 = por %p1180_p13, %p1179_p12 }
  0x13   : > { %p1174_p10 = pnand %p1172_p9, %p1162_p8 }
  0x15   : > { %p1175_p11 = pneg %p1174_p10 }
  0x17   : > { %p1182_p2 = pnand %p1181_p0, %p1175_p11 }
  0x19   : > { %1185 = shalt.err (!%p1182_p2)
}
  0x1a   : > { %s1282_s15 = smov 128   ;;  %s1283_s16 = smov 8  }
  0x1b   : > { %1105 = dma.hbm_to_vmem [thread:$0]  (!%p1369_p7), %s1548_s1, 6144, %s218_s10, [#allocation6], %s1282_s15, %s1282_s15, %s1283_s16  }
  0x1c   : > { %s1197_s19 = scalar_lea.vmem %s234_s13, 6144  ;;  %p1205_p10 = scmp.lt.s32.totalorder %s234_s13, %s234_s13 }
  0x1d   : > { %p1198_p3 = scmp.ne.s32.totalorder %s234_s13, %s1197_s19  ;;  %p1206_p1 = scmp.lt.s32.totalorder %s1197_s19, %s1197_s19 }
  0x1f   : > { %p1200_p6 = pnand %p1198_p3, %p1162_p8  ;;  %p1207_p12 = por %p1206_p1, %p1205_p10 }
  0x21   : > { %p1201_p9 = pneg %p1200_p6 }
  0x23   : > { %p1208_p11 = pnand %p1207_p12, %p1201_p9 }
  0x25   : > { %1211 = shalt.err (!%p1208_p11)
}
  0x26   : > { %1108 = dma.hbm_to_vmem [thread:$0]  (!%p1369_p7), %s1550_s3, 6144, %s234_s13, [#allocation6], %s1282_s15, %s1282_s15, %s1283_s16  }
  0x27   : > { %s1392_s22 = sadd.s32 1, %s1278_s29   ;;  %s29_s23 = sadd.s32 1, %s1274_s28 }
  0x28   : > { %s26_s24 = ssub.s32 %s1278_s29, %s1392_s22  ;;  %p36_p1 = scmp.ne.s32.totalorder %s1274_s28, %s1270_s27 }
  0x29   : > { %p27_p8 = scmp.eq.s32.totalorder %s26_s24, 0  ;;  %p37_p13 = scmp.eq.s32.totalorder %s1278_s29, 0 }
  0x2a   : > { %p1115_p0 = scmp.lt.s32.totalorder %s1278_s29, 2  ;;  %s256_s25 = sand.u32 1, %s1274_s28  }
  0x2b   : > { %s1403_s26 = scalar_select %p27_p8, %s1274_s28, %s29_s23  }
  0x2c   : > { %p38_p2 = por %p37_p13, %p36_p1  ;;  %s898_s9 = sshll.u32 %s256_s25, 3 }
  0x2d   : > { %s899_s10 = sshll.u32 %s1278_s29, 7  ;;  %s260_s13 = scalar_lea.vmem [#allocation3], %s898_s9 }
  0x2e   : > { %s1409_s14 = scalar_lea.hbm %s1547_s0, %s899_s10  ;;  %s267_s15 = sshll.u32 %s260_s13, 4  ;;  %s268_s15 = int_to_ptr.vmem [resolvable:$true] %s267_s15 }
  0x2f   : > { %p1411_p7 = pnand %p1115_p0, %p38_p2  ;;  %s257_s17 = scalar_lea.sflag [#allocation4], %s256_s25 }
  0x30   : > { %s1212_s18 = scalar_lea.hbm %s1409_s14, 128  ;;  %s1217_s20 = scalar_lea.hbm %s1547_s0, 256 }
  0x31   : > { %p1213_p3 = scmp.ne.s32.totalorder %s1409_s14, %s1212_s18  ;;  %p1214_p6 = pneg %p1411_p7 }
  0x32   : > { %p1218_p12 = scmp.lt.s32.totalorder %s1409_s14, %s1547_s0  ;;  %p1219_p11 = scmp.lt.s32.totalorder %s1217_s20, %s1212_s18 }
  0x33   : > { %p1215_p9 = pnand %p1214_p6, %p1213_p3 }
  0x34   : > { %p1220_p1 = por %p1219_p11, %p1218_p12 }
  0x35   : > { %p1216_p10 = pneg %p1215_p9 }
  0x37   : > { %p1221_p8 = pnand %p1220_p1, %p1216_p10 }
  0x39   : > { %1224 = shalt.err (!%p1221_p8)
}
  0x3a   : > { %s1225_s24 = scalar_lea.vmem %s268_s15, 128  ;;  %s1284_s25 = smov [#allocation3]  }
  0x3b   : > { %p1226_p13 = scmp.ne.s32.totalorder %s268_s15, %s1225_s24  ;;  %s1230_s9 = sshll.u32 %s1284_s25, 4  ;;  %s1231_s9 = int_to_ptr.vmem [resolvable:$false] %s1230_s9 }
  0x3c   : > { %s1232_s10 = scalar_lea.vmem %s1231_s9, 256  ;;  %p1233_p3 = scmp.lt.s32.totalorder %s268_s15, %s1231_s9 }
  0x3d   : > { %p1228_p0 = pnand %p1226_p13, %p1214_p6  ;;  %p1234_p9 = scmp.lt.s32.totalorder %s1232_s10, %s1225_s24 }
  0x3f   : > { %p1229_p2 = pneg %p1228_p0  ;;  %p1235_p4 = por %p1234_p9, %p1233_p3 }
  0x41   : > { %p1236_p5 = pnand %p1235_p4, %p1229_p2 }
  0x43   : > { %1239 = shalt.err (!%p1236_p5)
}
  0x44   : > { %1112 = dma.hbm_to_vmem [thread:$0]  (!%p1411_p7), %s1409_s14, 128, %s268_s15, %s257_s17  }
  0x45   : > { %p1562_p10 = scmp.ne.s32.totalorder %s1559_s8, 0 }
  0x46   : > { %s278_s11 = sand.u32 (!%p1562_p10), 1, %s1270_s27   ;;  %p1563_p6 = scmp.ne.s32.totalorder (!%p1562_p10), %s1558_s30, 0 }
  0x47   : > { %276 = sbr.rel (%p1562_p10) target bundleno = 1284 (0x504), region = 48  ;;  %s1432_s12 = sshll.u32 (!%p1562_p10), %s278_s11, 3 }
  0x48   : > { %s279_s13 = scalar_lea.sflag (!%p1562_p10), [#allocation4], %s278_s11  ;;  %s282_s18 = scalar_lea.vmem (!%p1562_p10), [#allocation3], %s1432_s12 }
  0x4c   : > { %1257 = dma.done.wait (%p1563_p6), %s279_s13, 128  }
  0x4d   : > { %1259 = vsyncadd (%p1563_p6), %s279_s13, 4294967168  ;;  %p1564_p4 = scmp.eq.s32.totalorder %s1349_s6, 0 }
  0x4f   : > { %1261 = dma.done.wait (%p1564_p4), [#allocation6], 12288   ;;  %p1565_p5 = pmov %p1564_p4 }
  0x50   : > { %v1285_v0 = vmov 0.0   ;;  %vm1286_vm0 = vmmov 0   ;;  %v374_v1 = vld [vmem:[#allocation5 + $0xf8] sm:$0xff]  ;;  %v373_v3 = vld [vmem:[#allocation5 + $0xf0] sm:$0xff]  ;;  %v372_v5 = vld [vmem:[#allocation5 + $0xe8] sm:$0xff]  ;;  %vm328_vm1 = vcmask 1040384  }
  0x51   : > { %1263 = vsyncadd (%p1565_p5), [#allocation6], 4294955008  ;;  %1022 = vmatprep.subr.mxu1 %v1285_v0  ;;  %1054 = vmatprep.mubr.msk.f32.mxu1 %vm1286_vm0, %v1285_v0  ;;  %v358_v2 = vld [vmem:[#allocation5 + $0x78] sm:$0xff]  ;;  %v357_v4 = vld [vmem:[#allocation5 + $0x70] sm:$0xff]  ;;  %vm333_vm2 = vcmask 1046528   ;;  %vm338_vm3 = vcmask 1045504  }
  0x52   : > { %918 = vmatprep.subr.mxu0 %v374_v1  ;;  %v390_v6 = vld [vmem:[#allocation5 + $0x178] sm:$0xff]  ;;  %v356_v7 = vld [vmem:[#allocation5 + $0x68] sm:$0xff]  ;;  %v389_v8 = vld [vmem:[#allocation5 + $0x170] sm:$0xff]  ;;  %s803_s10 = sld [smem:[#allocation2]]  ;;  %p320_p7 = scmp.lt.s32.totalorder %s1349_s6, 1  ;;  %vm807_vm5 = vcmask 7168  }
  0x53   : > { %919 = vmatpush3.msra.mxu0 %v358_v2  ;;  %1023 = vmatpush3.msra.mxu1 %v390_v6  ;;  %v371_v9 = vld [vmem:[#allocation5 + $0xe0] sm:$0xff]  ;;  %v388_v10 = vld [vmem:[#allocation5 + $0x168] sm:$0xff]  ;;  %v370_v12 = vld [vmem:[#allocation5 + $0xd8] sm:$0xff] }
  0x54   : > { %920 = vmatprep.subr.mxu0 %v373_v3  ;;  %1024 = vmatprep.subr.mxu1 %v1285_v0  ;;  %v355_v11 = vld [vmem:[#allocation5 + $0x60] sm:$0xff]  ;;  %v354_v14 = vld [vmem:[#allocation5 + $0x58] sm:$0xff]  ;;  %v369_v15 = vld [vmem:[#allocation5 + $0xd0] sm:$0xff]  ;;  %s1574_s6 = smov (!%p320_p7, %s1349_s6), 1 }
  0x55   : > { %921 = vmatpush3.msra.mxu0 %v357_v4  ;;  %1025 = vmatpush3.msra.mxu1 %v389_v8  ;;  %v387_v13 = vld [vmem:[#allocation5 + $0x160] sm:$0xff]  ;;  %v386_v16 = vld [vmem:[#allocation5 + $0x158] sm:$0xff]  ;;  %v353_v17 = vld [vmem:[#allocation5 + $0x50] sm:$0xff]  ;;  %s904_s11 = sshll.u32 %s1574_s6, 3 }
  0x56   : > { %922 = vmatprep.subr.mxu0 %v372_v5  ;;  %1026 = vmatprep.subr.mxu1 %v1285_v0  ;;  %v368_v18 = vld [vmem:[#allocation5 + $0xc8] sm:$0xff]  ;;  %v385_v19 = vld [vmem:[#allocation5 + $0x150] sm:$0xff]  ;;  %v367_v21 = vld [vmem:[#allocation5 + $0xc0] sm:$0xff] }
  0x57   : > { %923 = vmatpush3.msra.mxu0 %v356_v7  ;;  %1027 = vmatpush3.msra.mxu1 %v388_v10  ;;  %v352_v20 = vld [vmem:[#allocation5 + $0x48] sm:$0xff]  ;;  %v351_v23 = vld [vmem:[#allocation5 + $0x40] sm:$0xff]  ;;  %v366_v24 = vld [vmem:[#allocation5 + $0xb8] sm:$0xff] }
  0x58   : > { %924 = vmatprep.subr.mxu0 %v371_v9  ;;  %1028 = vmatprep.subr.mxu1 %v1285_v0  ;;  %v384_v22 = vld [vmem:[#allocation5 + $0x148] sm:$0xff]  ;;  %v383_v25 = vld [vmem:[#allocation5 + $0x140] sm:$0xff]  ;;  %v350_v26 = vld [vmem:[#allocation5 + $0x38] sm:$0xff] }
  0x59   : > { %925 = vmatpush3.msra.mxu0 %v355_v11  ;;  %1029 = vmatpush3.msra.mxu1 %v387_v13  ;;  %v324_v27 = vld [vmem:[%s282_s18] sm:$0xff]  ;;  %v364_v32 = vld [vmem:[#allocation5 + $0xa8] sm:$0xff]  ;;  %v363_v37 = vld [vmem:[#allocation5 + $0xa0] sm:$0xff]  ;;  %s323_s18 = scalar_lea.vmem %s1554_s7, %s904_s11 }
  0x5a   : > { %926 = vmatprep.subr.mxu0 %v370_v12  ;;  %1030 = vmatprep.subr.mxu1 %v1285_v0  ;;  %v365_v28 = vld [vmem:[#allocation5 + $0xb0] sm:$0xff]  ;;  %v382_v29 = vld [vmem:[#allocation5 + $0x138] sm:$0xff]  ;;  %v1455_v30 = vrot.slane %v324_v27, 7  ;;  %v348_v34 = vld [vmem:[#allocation5 + $0x28] sm:$0xff] }
  0x5b   : > { %927 = vmatpush3.msra.mxu0 %v354_v14  ;;  %1031 = vmatpush3.msra.mxu1 %v386_v16  ;;  %v349_v31 = vld [vmem:[#allocation5 + $0x30] sm:$0xff]  ;;  %v380_v38 = vld [vmem:[#allocation5 + $0x128] sm:$0xff]  ;;  %v347_v39 = vld [vmem:[#allocation5 + $0x20] sm:$0xff] }
  0x5c   : > { %928 = vmatprep.subr.mxu0 %v369_v15  ;;  %1032 = vmatprep.subr.mxu1 %v1285_v0  ;;  %v381_v33 = vld [vmem:[#allocation5 + $0x130] sm:$0xff]  ;;  %v329_v35 = vsel %vm328_vm1, 0.0, %v1455_v30  ;;  %v330_v36 = vsel %vm328_vm1, %v1455_v30, 0.0  ;;  %v362_v40 = vld [vmem:[#allocation5 + $0x98] sm:$0xff]  ;;  %v379_v41 = vld [vmem:[#allocation5 + $0x120] sm:$0xff] }
  0x5d   : > { %929 = vmatpush3.msra.mxu0 %v353_v17  ;;  %1033 = vmatpush3.msra.mxu1 %v385_v19  ;;  %v334_v42 = vrot.slane %v329_v35, 1  ;;  %v335_v43 = vrot.slane %v330_v36, 1  ;;  %v346_v44 = vld [vmem:[#allocation5 + $0x18] sm:$0xff]  ;;  %v361_v45 = vld [vmem:[#allocation5 + $0x90] sm:$0xff]  ;;  %v360_v48 = vld [vmem:[#allocation5 + $0x88] sm:$0xff]  ;;  %v339_v53 = vrot.slane %v329_v35, 2 }
  0x5e   : > { %930 = vmatprep.subr.mxu0 %v368_v18  ;;  %1034 = vmatprep.subr.mxu1 %v1285_v0  ;;  %v378_v46 = vld [vmem:[#allocation5 + $0x118] sm:$0xff]  ;;  %v345_v47 = vld [vmem:[#allocation5 + $0x10] sm:$0xff]  ;;  %v344_v50 = vld [vmem:[#allocation5 + $0x8] sm:$0xff]  ;;  %v340_v54 = vrot.slane %v330_v36, 2 }
  0x5f   : > { %931 = vmatpush3.msra.mxu0 %v352_v20  ;;  %1035 = vmatpush3.msra.mxu1 %v384_v22  ;;  %v336_v49 = vsel %vm333_vm2, %v334_v42, %v335_v43  ;;  %v377_v51 = vld [vmem:[#allocation5 + $0x110] sm:$0xff]  ;;  %v359_v52 = vld [vmem:[#allocation5 + $0x80] sm:$0xff]  ;;  %v376_v56 = vld [vmem:[#allocation5 + $0x108] sm:$0xff] }
  0x60   : > { %932 = vmatprep.subr.mxu0 %v367_v21  ;;  %1036 = vmatprep.subr.mxu1 %v1285_v0  ;;  %v343_v55 = vld [vmem:[#allocation5] sm:$0xff]  ;;  %vm1469_vm4 = vmneg %vm328_vm1  ;;  %v341_v59 = vsel %vm338_vm3, %v339_v53, %v340_v54  ;;  %v905_v62 = vld [vmem:[%s1549_s2] ss:$0 sm:$0xff] }
  0x61   : > { %933 = vmatpush3.msra.mxu0 %v351_v23  ;;  %1037 = vmatpush3.msra.mxu1 %v383_v25  ;;  %v375_v58 = vld [vmem:[#allocation5 + $0x100] sm:$0xff]  ;;  %v607_v9 = vld [vmem:[#allocation7 + $0xf8] sm:$0xff]  ;;  %v606_v12 = vld [vmem:[#allocation7 + $0xf0] sm:$0xff] }
  0x62   : > { %934 = vmatprep.subr.mxu0 %v366_v24  ;;  %1038 = vmatprep.subr.mxu1 %v1285_v0  ;;  %v623_v10 = vld [vmem:[#allocation7 + $0x178] sm:$0xff]  ;;  %v622_v13 = vld [vmem:[#allocation7 + $0x170] sm:$0xff]  ;;  %v605_v15 = vld [vmem:[#allocation7 + $0xe8] sm:$0xff] }
  0x63   : > { %935 = vmatpush3.msra.mxu0 %v350_v26  ;;  %1039 = vmatpush3.msra.mxu1 %v382_v29  ;;  %v591_v11 = vld [vmem:[#allocation7 + $0x78] sm:$0xff]  ;;  %v590_v14 = vld [vmem:[#allocation7 + $0x70] sm:$0xff]  ;;  %v621_v16 = vld [vmem:[#allocation7 + $0x168] sm:$0xff] }
  0x64   : > { %936 = vmatprep.subr.mxu0 %v365_v28  ;;  %1040 = vmatprep.subr.mxu1 %v1285_v0  ;;  %v589_v17 = vld [vmem:[#allocation7 + $0x68] sm:$0xff]  ;;  %v604_v18 = vld [vmem:[#allocation7 + $0xe0] sm:$0xff]  ;;  %v603_v21 = vld [vmem:[#allocation7 + $0xd8] sm:$0xff] }
  0x65   : > { %937 = vmatpush3.msra.mxu0 %v349_v31  ;;  %1041 = vmatpush3.msra.mxu1 %v381_v33  ;;  %v620_v19 = vld [vmem:[#allocation7 + $0x160] sm:$0xff]  ;;  %v619_v22 = vld [vmem:[#allocation7 + $0x158] sm:$0xff]  ;;  %v602_v24 = vld [vmem:[#allocation7 + $0xd0] sm:$0xff] }
  0x66   : > { %938 = vmatprep.subr.mxu0 %v364_v32  ;;  %1042 = vmatprep.subr.mxu1 %v1285_v0  ;;  %v588_v20 = vld [vmem:[#allocation7 + $0x60] sm:$0xff]  ;;  %v587_v23 = vld [vmem:[#allocation7 + $0x58] sm:$0xff]  ;;  %v618_v25 = vld [vmem:[#allocation7 + $0x150] sm:$0xff] }
  0x67   : > { %939 = vmatpush3.msra.mxu0 %v348_v34  ;;  %1043 = vmatpush3.msra.mxu1 %v380_v38  ;;  %v586_v26 = vld [vmem:[#allocation7 + $0x50] sm:$0xff]  ;;  %v601_v27 = vld [vmem:[#allocation7 + $0xc8] sm:$0xff]  ;;  %v616_v31 = vld [vmem:[#allocation7 + $0x140] sm:$0xff] }
  0x68   : > { %940 = vmatprep.subr.mxu0 %v363_v37  ;;  %1044 = vmatprep.subr.mxu1 %v1285_v0  ;;  %v617_v28 = vld [vmem:[#allocation7 + $0x148] sm:$0xff]  ;;  %v584_v32 = vld [vmem:[#allocation7 + $0x40] sm:$0xff]  ;;  %v599_v33 = vld [vmem:[#allocation7 + $0xb8] sm:$0xff] }
  0x69   : > { %941 = vmatpush3.msra.mxu0 %v347_v39  ;;  %1045 = vmatpush3.msra.mxu1 %v379_v41  ;;  %v585_v29 = vld [vmem:[#allocation7 + $0x48] sm:$0xff]  ;;  %v615_v34 = vld [vmem:[#allocation7 + $0x138] sm:$0xff]  ;;  %v598_v36 = vld [vmem:[#allocation7 + $0xb0] sm:$0xff] }
  0x6a   : > { %942 = vmatprep.subr.mxu0 %v362_v40  ;;  %1046 = vmatprep.subr.mxu1 %v1285_v0  ;;  %v583_v35 = vld [vmem:[#allocation7 + $0x38] sm:$0xff]  ;;  %v614_v37 = vld [vmem:[#allocation7 + $0x130] sm:$0xff]  ;;  %v597_v39 = vld [vmem:[#allocation7 + $0xa8] sm:$0xff] }
  0x6b   : > { %943 = vmatpush3.msra.mxu0 %v346_v44  ;;  %1047 = vmatpush3.msra.mxu1 %v378_v46  ;;  %v582_v38 = vld [vmem:[#allocation7 + $0x30] sm:$0xff]  ;;  %v613_v40 = vld [vmem:[#allocation7 + $0x128] sm:$0xff]  ;;  %v596_v42 = vld [vmem:[#allocation7 + $0xa0] sm:$0xff] }
  0x6c   : > { %944 = vmatprep.subr.mxu0 %v361_v45  ;;  %1048 = vmatprep.subr.mxu1 %v1285_v0  ;;  %v581_v41 = vld [vmem:[#allocation7 + $0x28] sm:$0xff]  ;;  %v612_v43 = vld [vmem:[#allocation7 + $0x120] sm:$0xff]  ;;  %v595_v45 = vld [vmem:[#allocation7 + $0x98] sm:$0xff] }
  0x6d   : > { %945 = vmatpush3.msra.mxu0 %v345_v47  ;;  %460 = vmatprep.mubr.f32.mxu0 %v336_v49  ;;  %v580_v44 = vld [vmem:[#allocation7 + $0x20] sm:$0xff]  ;;  %v611_v46 = vld [vmem:[#allocation7 + $0x118] sm:$0xff]  ;;  %v610_v49 = vld [vmem:[#allocation7 + $0x110] sm:$0xff] }
  0x6e   : > { %946 = vmatprep.subr.mxu0 %v360_v48  ;;  %1049 = vmatpush3.msra.mxu1 %v377_v51  ;;  %v579_v47 = vld [vmem:[#allocation7 + $0x18] sm:$0xff]  ;;  %v594_v48 = vld [vmem:[#allocation7 + $0x90] sm:$0xff]  ;;  %v593_v51 = vld [vmem:[#allocation7 + $0x88] sm:$0xff] }
  0x6f   : > { %947 = vmatpush3.msra.mxu0 %v344_v50  ;;  %1050 = vmatprep.subr.mxu1 %v1285_v0  ;;  %v578_v50 = vld [vmem:[#allocation7 + $0x10] sm:$0xff]  ;;  %v577_v53 = vld [vmem:[#allocation7 + $0x8] sm:$0xff]  ;;  %v592_v54 = vld [vmem:[#allocation7 + $0x80] sm:$0xff] }
  0x70   : > { %948 = vmatprep.subr.mxu0 %v359_v52  ;;  %1051 = vmatpush3.msra.mxu1 %v376_v56  ;;  %v609_v52 = vld [vmem:[#allocation7 + $0x108] sm:$0xff]  ;;  %v576_v56 = vld [vmem:[#allocation7] sm:$0xff] }
  0x71   : > { %949 = vmatpush3.msra.mxu0 %v343_v55  ;;  %1052 = vmatprep.subr.mxu1 %v1285_v0  ;;  %v608_v55 = vld [vmem:[#allocation7 + $0x100] sm:$0xff] }
  0x72   : > { %907 = vmatmul.mubr.msk.f32.vlgmr.msra.gmra.mxu0 %vm1469_vm4, %v1455_v30  ;;  %1053 = vmatpush3.msra.mxu1 %v375_v58  ;;  %v600_v30 = vld [vmem:[#allocation7 + $0xc0] sm:$0xff] }
  0x73   : > { %1055 = vmatmul.mubr.f32.vlgmr.msra.gmra.mxu1 %v341_v59  ;;  %1057 = vmatprep.subr.mxu1 %v1285_v0 }
  0x74   : > { %1089 = vmatprep.mubr.msk.f32.mxu1 %vm1286_vm0, %v1285_v0  ;;  %970 = vmatprep.subr.mxu0 %v607_v9 }
  0x75   : > { %1058 = vmatpush3.msra.mxu1 %v623_v10  ;;  %971 = vmatpush3.msra.mxu0 %v591_v11 }
  0x76   : > { %1059 = vmatprep.subr.mxu1 %v1285_v0  ;;  %972 = vmatprep.subr.mxu0 %v606_v12 }
  0x77   : > { %1060 = vmatpush3.msra.mxu1 %v622_v13  ;;  %973 = vmatpush3.msra.mxu0 %v590_v14 }
  0x78   : > { %1061 = vmatprep.subr.mxu1 %v1285_v0  ;;  %974 = vmatprep.subr.mxu0 %v605_v15 }
  0x79   : > { %1062 = vmatpush3.msra.mxu1 %v621_v16  ;;  %975 = vmatpush3.msra.mxu0 %v589_v17  ;;  %v910_v16 = vld [vmem:[%s1551_s4] ss:$0 sm:$0xff] }
  0x7a   : > { %1063 = vmatprep.subr.mxu1 %v1285_v0  ;;  %976 = vmatprep.subr.mxu0 %v604_v18 }
  0x7b   : > { %1064 = vmatpush3.msra.mxu1 %v620_v19  ;;  %977 = vmatpush3.msra.mxu0 %v588_v20 }
  0x7c   : > { %1065 = vmatprep.subr.mxu1 %v1285_v0  ;;  %978 = vmatprep.subr.mxu0 %v603_v21 }
  0x7d   : > { %1066 = vmatpush3.msra.mxu1 %v619_v22  ;;  %979 = vmatpush3.msra.mxu0 %v587_v23 }
  0x7e   : > { %1067 = vmatprep.subr.mxu1 %v1285_v0  ;;  %980 = vmatprep.subr.mxu0 %v602_v24 }
  0x7f   : > { %1068 = vmatpush3.msra.mxu1 %v618_v25  ;;  %981 = vmatpush3.msra.mxu0 %v586_v26 }
  0x80   : > { %1069 = vmatprep.subr.mxu1 %v1285_v0  ;;  %982 = vmatprep.subr.mxu0 %v601_v27 }
  0x81   : > { %1070 = vmatpush3.msra.mxu1 %v617_v28  ;;  %983 = vmatpush3.msra.mxu0 %v585_v29  ;;  %v913_v28 = vld [vmem:[%s1551_s4 + $0x1] ss:$0 sm:$0xff] }
  0x82   : > { %1071 = vmatprep.subr.mxu1 %v1285_v0  ;;  %984 = vmatprep.subr.mxu0 %v600_v30  ;;  %v914_v30 = vld [vmem:[%s1551_s4 + $0x2] ss:$0 sm:$0xff] }
  0x83   : > { %1072 = vmatpush3.msra.mxu1 %v616_v31  ;;  %985 = vmatpush3.msra.mxu0 %v584_v32 }
  0x84   : > { %1073 = vmatprep.subr.mxu1 %v1285_v0  ;;  %986 = vmatprep.subr.mxu0 %v599_v33  ;;  %v915_v33 = vld [vmem:[%s1552_s5] ss:$0 sm:$0xff] }
  0x85   : > { %1074 = vmatpush3.msra.mxu1 %v615_v34  ;;  %987 = vmatpush3.msra.mxu0 %v583_v35 }
  0x86   : > { %1075 = vmatprep.subr.mxu1 %v1285_v0  ;;  %988 = vmatprep.subr.mxu0 %v598_v36  ;;  %v804_v36 = vstv %s803_s10 }
  0x87   : > { %1076 = vmatpush3.msra.mxu1 %v614_v37  ;;  %989 = vmatpush3.msra.mxu0 %v582_v38 }
  0x88   : > { %1077 = vmatprep.subr.mxu1 %v1285_v0  ;;  %990 = vmatprep.subr.mxu0 %v597_v39 }
  0x89   : > { %1078 = vmatpush3.msra.mxu1 %v613_v40  ;;  %991 = vmatpush3.msra.mxu0 %v581_v41 }
  0x8a   : > { %1079 = vmatprep.subr.mxu1 %v1285_v0  ;;  %992 = vmatprep.subr.mxu0 %v596_v42 }
  0x8b   : > { %1080 = vmatpush3.msra.mxu1 %v612_v43  ;;  %993 = vmatpush3.msra.mxu0 %v580_v44 }
  0x8c   : > { %1081 = vmatprep.subr.mxu1 %v1285_v0  ;;  %994 = vmatprep.subr.mxu0 %v595_v45 }
  0x8d   : > { %1082 = vmatpush3.msra.mxu1 %v611_v46  ;;  %995 = vmatpush3.msra.mxu0 %v579_v47 }
  0x8e   : > { %1083 = vmatprep.subr.mxu1 %v1285_v0  ;;  %996 = vmatprep.subr.mxu0 %v594_v48 }
  0x8f   : > { %1084 = vmatpush3.msra.mxu1 %v610_v49  ;;  %997 = vmatpush3.msra.mxu0 %v578_v50 }
  0x90   : > { %1085 = vmatprep.subr.mxu1 %v1285_v0  ;;  %998 = vmatprep.subr.mxu0 %v593_v51 }
  0x91   : > { %1086 = vmatpush3.msra.mxu1 %v609_v52  ;;  %999 = vmatpush3.msra.mxu0 %v577_v53 }
  0x92   : > { %1087 = vmatprep.subr.mxu1 %v1285_v0  ;;  %1000 = vmatprep.subr.mxu0 %v592_v54 }
  0x93   : > { %1088 = vmatpush3.msra.mxu1 %v608_v55  ;;  %1001 = vmatpush3.msra.mxu0 %v576_v56 }
 0x132   : > { %v950_v60 = vpop.f32.mrf.mxu0 }
 0x133   : > { %v532_v63 = vpop.f32.mrf.mxu1 }
 0x134   : > { %v951_v61 = vpop.f32.mrf.mxu0 }
 0x135   : > { %v952_v1 = vadd.f32 %v951_v61, %v950_v60  ;;  %v1056_v2 = vpop.f32.mrf.mxu1 }
 0x137   : > { %v463_v3 = vadd.f32 %v952_v1, %v905_v62  ;;  %v908_v62 = vld [vmem:[%s1549_s2 + $0x1] ss:$0 sm:$0xff]  ;;  %v909_v1 = vld [vmem:[%s1549_s2 + $0x2] ss:$0 sm:$0xff] }
 0x139   : > { %v533_v4 = vadd.f32 %v532_v63, %v463_v3 }
 0x13b   : > { %536 = vadd.xlane.f32.xlu0 %v533_v4 }
 0x1c4   : > { %v537_v5 = vpop.xlane.xlu0 %536 }
 0x1c5   : > { %v539_v6 = vmul.f32 0.0078125, %v537_v5 }
 0x1c7   : > { %v1485_v7 = vsub.f32 %v533_v4, %v539_v6 }
 0x1c9   : > { %v541_v8 = vmul.f32 %v1485_v7, %v1485_v7 }
 0x1cb   : > { %542 = vadd.xlane.f32.xlu0 %v541_v8 }
 0x254   : > { %v543_v58 = vpop.xlane.xlu0 %542 }
 0x255   : > { %v544_v59 = vmul.f32 0.0078125, %v543_v58 }
 0x257   : > { %v545_v60 = vadd.f32 1e-05, %v544_v59 }
 0x259   : > { %1156 = vrsqrt.f32 %v545_v60 }
 0x266   : > { %v1157_v61 = vpop.eup %1156 }
 0x267   : > { %v547_v63 = vmul.f32 %v1157_v61, %v1485_v7 }
 0x269   : > { %v553_v2 = vmul.f32 %v908_v62, %v547_v63 }
 0x26b   : > { %v559_v0 = vadd.f32 %v909_v1, %v553_v2 }
 0x26d   : > { %v560_v3 = vmax.f32 %v559_v0, 0.0 }
 0x26f   : > { %v562_v4 = vrot.slane %v560_v3, 7 }
 0x271   : > { %v564_v5 = vsel %vm328_vm1, 0.0, %v562_v4  ;;  %v565_v6 = vsel %vm328_vm1, %v562_v4, 0.0 }
 0x272   : > { %v568_v8 = vrot.slane %v564_v5, 1  ;;  %v569_v9 = vrot.slane %v565_v6, 1  ;;  %v572_v10 = vrot.slane %v564_v5, 2  ;;  %v573_v11 = vrot.slane %v565_v6, 2 }
 0x274   : > { %v570_v12 = vsel %vm333_vm2, %v568_v8, %v569_v9  ;;  %v574_v7 = vsel %vm338_vm3, %v572_v10, %v573_v11 }
 0x275   : > { %693 = vmatprep.mubr.f32.mxu0 %v570_v12  ;;  %1090 = vmatmul.mubr.f32.vlgmr.msra.gmra.mxu1 %v574_v7 }
 0x276   : > { %912 = vmatmul.mubr.msk.f32.vlgmr.msra.gmra.mxu0 %vm1469_vm4, %v562_v4 }
 0x335   : > { %v765_v13 = vpop.f32.mrf.mxu1 }
 0x336   : > { %v1002_v14 = vpop.f32.mrf.mxu0 }
 0x337   : > { %v1091_v15 = vpop.f32.mrf.mxu1 }
 0x338   : > { %v1003_v17 = vpop.f32.mrf.mxu0 }
 0x339   : > { %v1004_v18 = vadd.f32 %v1003_v17, %v1002_v14 }
 0x33b   : > { %v696_v19 = vadd.f32 %v1004_v18, %v910_v16 }
 0x33d   : > { %v766_v20 = vadd.f32 %v765_v13, %v696_v19 }
 0x33f   : > { %769 = vadd.xlane.f32.xlu1 %v766_v20 }
 0x3c8   : > { %v770_v21 = vpop.xlane.xlu1 %769 }
 0x3c9   : > { %v771_v22 = vmul.f32 0.0078125, %v770_v21 }
 0x3cb   : > { %v772_v23 = vsub.f32 %v766_v20, %v771_v22 }
 0x3cd   : > { %v773_v24 = vmul.f32 %v772_v23, %v772_v23 }
 0x3cf   : > { %774 = vadd.xlane.f32.xlu1 %v773_v24 }
 0x458   : > { %v775_v57 = vpop.xlane.xlu1 %774 }
 0x459   : > { %v776_v25 = vmul.f32 0.0078125, %v775_v57 }
 0x45b   : > { %v777_v26 = vadd.f32 1e-05, %v776_v25 }
 0x45d   : > { %1158 = vrsqrt.f32 %v777_v26 }
 0x46a   : > { %v1159_v27 = vpop.eup %1158 }
 0x46b   : > { %v779_v29 = vmul.f32 %v1159_v27, %v772_v23 }
 0x46d   : > { %v785_v31 = vmul.f32 %v913_v28, %v779_v29 }
 0x46f   : > { %v791_v32 = vadd.f32 %v914_v30, %v785_v31 }
 0x471   : > { %v792_v34 = vmax.f32 %v791_v32, 0.0 }
 0x473   : > { %v800_v35 = vmul.f32 %v915_v33, %v792_v34 }
 0x475   : > { %801 = vadd.xlane.f32.xlu0 %v800_v35 }
 0x4fe   : > { %v802_v37 = vpop.xlane.xlu0 %801 }
 0x4ff   : > { %v805_v38 = vadd.f32 %v804_v36, %v802_v37 }
 0x501   : > { %v806_v39 = vmax.f32 %v805_v38, 0.0 }
 0x503   : > { %808 = vst.msk [vmem:[%s323_s18] sm:$0xff] %vm807_vm5, %v806_v39 }
 0x504 PF: > { %s1568_s30 = smov %s1403_s26  ;;  %p19_p12 = scmp.ge.s32.totalorder %s1392_s22, 4  }
 0x505   : > { %s1569_s26 = smov %s1270_s27  ;;  %s1570_s27 = smov %s1274_s28 }
 0x506   : > { %s1571_s28 = smov %s1568_s30  ;;  %s1572_s29 = smov %s1392_s22 }
 0x507   :  { %21 = sbr.rel (!%p19_p12) target bundleno = 6 (0x6), region = 96 }
 0x50c   :  { %828 = vsyncpa [#allocation4], 1 }
 0x50d   :  { %830 = vsyncpa [#allocation4 + $0x1], 1 }
 0x50e   :  { %831 = vsyncpa [#allocation6], 1 }

</bundles_post_ra>
